<compile_context>
chip_gen: v7x
topology: tpu7x:2x2x1
jax: 0.10.0
libtpu: 0.0.40
codegen_flags: <defaults>
</compile_context>

<pallas_src>
import functools

import jax
import jax.numpy as jnp
from jax import lax
from jax.experimental import pallas as pl
from jax.experimental.pallas import tpu as pltpu


def _round_up(x, m):
    return ((x + m - 1) // m) * m


# ---------------------------------------------------------------------------
# Tile selection (VMEM-aware, v7x-safe).
# ---------------------------------------------------------------------------
_VMEM_BUDGET = 40 << 20       # keep well under v7x's 64 MiB physical VMEM
_VMEM_LIMIT = 48 << 20        # explicit scoped-VMEM limit for both passes


def _pass2_bytes(t, D):
    # 2 bf16 operands x 2 pipeline buffers + f32 dot tile + select temps.
    return 2 * 2 * t * D * 2 + 3 * t * t * 4


def _pick_gram_tile(B, D, block):
    Bp8 = _round_up(B, 8)
    cap = block if block is not None else (1024 if D <= 1024 else 512)
    cap = max(128, (cap // 128) * 128)          # lane-aligned when n > 1
    if Bp8 <= cap and _pass2_bytes(Bp8, D) <= _VMEM_BUDGET:
        return Bp8                              # whole (padded) batch, n == 1
    t = cap
    while t > 128 and _pass2_bytes(t, D) > _VMEM_BUDGET:
        t //= 2
    return t


def _pick_norm_tile(gram_tile, D):
    # f32 input block (double-buffered) + bf16 output block (double-buffered).
    t1 = gram_tile
    while 12 * t1 * D > (24 << 20) and t1 % 16 == 0:
        t1 //= 2                                # stays a mult-of-8 divisor
    return t1


# ---------------------------------------------------------------------------
# Pass 1: row-wise L2 normalize (f32 math, bf16 output for the MXU).
# ---------------------------------------------------------------------------
def _normalize_kernel(x_ref, o_ref):
    x = x_ref[...].astype(jnp.float32)                      # [T1, D]
    sq = jnp.sum(x * x, axis=1, keepdims=True)              # [T1, 1]
    # torch F.normalize: x / max(||x||, 1e-12)  ==  x * rsqrt(max(||x||^2, 1e-24))
    inv = lax.rsqrt(jnp.maximum(sq, 1e-24))
    o_ref[...] = (x * inv).astype(o_ref.dtype)


# ---------------------------------------------------------------------------
# Pass 2: one upper-triangular (TM, TN) Gram tile -> two weighted partial sums.
# ---------------------------------------------------------------------------
def _gram_tile_kernel(it_ref, jt_ref, fr_ref, fc_ref, labr_ref, labc_ref,
                      out_ref):
    t = pl.program_id(0)
    # x2 weight for off-diagonal tiles (the mirrored tile is never visited).
    w = jnp.where(it_ref[t] == jt_ref[t], 1.0, 2.0)

    # bf16 inputs, f32 accumulation; contraction on the last dim of both
    # operands -> no explicit transpose / extra VMEM copy of the RHS.
    dot = lax.dot_general(
        fr_ref[...], fc_ref[...],
        dimension_numbers=(((1,), (1,)), ((), ())),
        preferred_element_type=jnp.float32)                  # [tm, tn] f32

    # Same-class mask: pure broadcast compare (labels supplied in both
    # orientations by the wrapper, so no in-kernel relayout).
    same = labr_ref[...] == labc_ref[...]                    # [tm, tn] bool

    tile_same = jnp.sum(jnp.where(same, dot, 0.0))           # includes diag
    tile_total = jnp.sum(dot)

    # Single unmasked, lane-dense (8,128) store per step; partials at lanes 0/1.
    lane = lax.broadcasted_iota(jnp.int32, out_ref.shape, 1)
    out_ref[...] = jnp.where(lane == 0, w * tile_same,
                             jnp.where(lane == 1, w * tile_total, 0.0))


# ---------------------------------------------------------------------------
# Wrapper
# ---------------------------------------------------------------------------
@functools.partial(jax.jit, static_argnames=("gamma", "block"))
def orthogonal_projection_loss(features, labels, gamma=0.5, block=None):
    """features: [B, D] float, labels: [B] int -> scalar float32 loss."""
    B, D = features.shape
    labels = labels.astype(jnp.int32)

    tile = _pick_gram_tile(B, D, block)
    Bp = _round_up(B, tile)
    pad = Bp - B
    feats_p = jnp.pad(features, ((0, pad), (0, 0))) if pad else features
    labs_p = jnp.pad(labels, (0, pad), constant_values=-1) if pad else labels
    n = Bp // tile

    # ---- Pass 1: normalize -> bf16 ---------------------------------------
    t1 = _pick_norm_tile(tile, D)
    feats_n = pl.pallas_call(
        _normalize_kernel,
        out_shape=jax.ShapeDtypeStruct((Bp, D), jnp.bfloat16),
        grid_spec=pltpu.PrefetchScalarGridSpec(
            num_scalar_prefetch=0,
            grid=(Bp // t1,),
            in_specs=[pl.BlockSpec((t1, D), lambda i: (i, 0))],
            out_specs=pl.BlockSpec((t1, D), lambda i: (i, 0))),
        compiler_params=pltpu.CompilerParams(
            dimension_semantics=("parallel",),
            vmem_limit_bytes=_VMEM_LIMIT),
    )(feats_p)

    # ---- Pass 2: upper-triangular tiled Gram + masked partial sums --------
    # Packed (i, j>=i) tile tables, i-major so the row tile stays resident.
    pairs = [(i, j) for i in range(n) for j in range(i, n)]
    T = len(pairs)
    i_idx = jnp.asarray([p[0] for p in pairs], dtype=jnp.int32)
    j_idx = jnp.asarray([p[1] for p in pairs], dtype=jnp.int32)

    lab_col = labs_p.reshape(Bp, 1)   # (tile, 1) blocks
    lab_row = labs_p.reshape(1, Bp)   # (1, tile) blocks

    partials = pl.pallas_call(
        _gram_tile_kernel,
        out_shape=jax.ShapeDtypeStruct((T * 8, 128), jnp.float32),
        grid_spec=pltpu.PrefetchScalarGridSpec(
            num_scalar_prefetch=2,
            grid=(T,),
            in_specs=[
                pl.BlockSpec((tile, D), lambda t, it, jt: (it[t], 0)),  # rows
                pl.BlockSpec((tile, D), lambda t, it, jt: (jt[t], 0)),  # cols
                pl.BlockSpec((tile, 1), lambda t, it, jt: (it[t], 0)),  # lab r
                pl.BlockSpec((1, tile), lambda t, it, jt: (0, jt[t])),  # lab c
            ],
            out_specs=pl.BlockSpec((8, 128), lambda t, it, jt: (t, 0))),
        compiler_params=pltpu.CompilerParams(
            dimension_semantics=("parallel",),      # 2-TC split on v7x
            vmem_limit_bytes=_VMEM_LIMIT),
    )(i_idx, j_idx, feats_n, feats_n, lab_col, lab_row)

    parts = partials.reshape(T, 8, 128)
    same_sum = jnp.sum(parts[:, 0, 0])       # full symmetric matrix, incl. diag
    grand_sum = jnp.sum(parts[:, 0, 1])      # sum of all dot products

    # Exact trace of the bf16 normalized features (padded rows are zero), so
    # the diagonal removal matches the in-kernel bf16 self-dots.
    trace = jnp.sum(jnp.square(feats_n.astype(jnp.float32)))
    pos_sum = same_sum - trace
    neg_sum = grand_sum - same_sum

    # Pair counts from the un-padded labels (O(B^2) bool reduce; could be a
    # class histogram, but it is negligible next to the Gram pass).
    cnt_same = jnp.sum((labels[:, None] == labels[None, :]).astype(jnp.float32))
    cnt_pos = cnt_same - B
    cnt_neg = float(B) * float(B) - cnt_same

    # Match torch: numerator is exactly 0 when a pair class is empty.
    pos_mean = jnp.where(cnt_pos > 0, pos_sum / (cnt_pos + 1e-6), 0.0)
    neg_mean = jnp.where(cnt_neg > 0, neg_sum / (cnt_neg + 1e-6), 0.0)
    return 1.0 - pos_mean + gamma * neg_mean


# ---------------------------------------------------------------------------
# Pure-JAX reference mirroring the PyTorch module (f32 throughout).
# ---------------------------------------------------------------------------
def _reference(features, labels, gamma=0.5):
    f = features / jnp.maximum(
        jnp.linalg.norm(features, axis=1, keepdims=True), 1e-12)
    lab = labels[:, None]
    mask = lab == lab.T
    eye = jnp.eye(mask.shape[0], dtype=bool)
    mask_pos = jnp.where(eye, 0.0, mask.astype(jnp.float32))
    mask_neg = (~mask).astype(jnp.float32)
    dp = f @ f.T
    pos = jnp.sum(mask_pos * dp) / (jnp.sum(mask_pos) + 1e-6)
    neg = jnp.sum(mask_neg * dp) / (jnp.sum(mask_neg) + 1e-6)
    return 1.0 - pos + gamma * neg


if __name__ == "__main__":
    key = jax.random.PRNGKey(0)
    kf, kl = jax.random.split(key)

    # Case 1: tiny batch (single tile, exercises the B < tile path).
    B1, D1 = 8, 32
    f1 = jax.random.normal(kf, (B1, D1), dtype=jnp.float32)
    l1 = jax.random.randint(kl, (B1,), 0, 3, dtype=jnp.int32)
    out1 = jax.block_until_ready(orthogonal_projection_loss(f1, l1, gamma=0.5))
    ref1 = _reference(f1, l1, gamma=0.5)
    assert jnp.allclose(out1, ref1, atol=2e-2, rtol=2e-2), (out1, ref1)

    # Case 2: forces a multi-tile triangular grid (300 -> 384, 3x3 tiles of
    # 128 -> 6 packed steps) and exercises batch padding + scalar prefetch.
    kf2, kl2 = jax.random.split(kl)
    B2, D2 = 300, 64
    f2 = jax.random.normal(kf2, (B2, D2), dtype=jnp.float32)
    l2 = jax.random.randint(kl2, (B2,), 0, 10, dtype=jnp.int32)
    out2 = jax.block_until_ready(
        orthogonal_projection_loss(f2, l2, gamma=0.5, block=128))
    ref2 = _reference(f2, l2, gamma=0.5)
    assert jnp.allclose(out2, ref2, atol=2e-2, rtol=2e-2), (out2, ref2)

    # Case 3: default (auto) tile selection on the same data.
    out3 = jax.block_until_ready(orthogonal_projection_loss(f2, l2, gamma=0.5))
    assert jnp.allclose(out3, ref2, atol=2e-2, rtol=2e-2), (out3, ref2)

    print("KERNEL_OK")
</pallas_src>

<mosaic_0001>
module attributes {stable_mosaic.version = 11 : i64} {
  func.func @_normalize_kernel(%arg0: i32, %arg1: memref<8x32xf32, #tpu.memory_space<vmem>>, %arg2: memref<8x32xbf16, #tpu.memory_space<vmem>>) attributes {dimension_semantics = [#tpu.dimension_semantics<parallel>], iteration_bounds = array<i64: 1>, scalar_prefetch = 0 : i64, scratch_operands = 0 : i64, tpu.core_type = #tpu.core_type<tc>, window_params = [{transform_indices = @transform_0, window_bounds = array<i64: 8, 32>}, {transform_indices = @transform_1, window_bounds = array<i64: 8, 32>}]} {
    %c0 = arith.constant 0 : index
    %c0_0 = arith.constant 0 : index
    %0 = vector.load %arg1[%c0, %c0_0] : memref<8x32xf32, #tpu.memory_space<vmem>>, vector<8x32xf32>
    %1 = arith.mulf %0, %0 : vector<8x32xf32>
    %cst = arith.constant dense<0.000000e+00> : vector<8xf32>
    %2 = vector.multi_reduction <add>, %1, %cst [1] : vector<8x32xf32> to vector<8xf32>
    %3 = vector.shape_cast %2 : vector<8xf32> to vector<8x1xf32>
    %cst_1 = arith.constant 1.000000e-24 : f32
    %4 = vector.broadcast %cst_1 : f32 to vector<8x1xf32>
    %5 = arith.maximumf %3, %4 : vector<8x1xf32>
    %6 = math.rsqrt %5 : vector<8x1xf32>
    %7 = vector.broadcast %6 : vector<8x1xf32> to vector<8x32xf32>
    %8 = arith.mulf %0, %7 : vector<8x32xf32>
    %9 = arith.truncf %8 : vector<8x32xf32> to vector<8x32xbf16>
    %c0_2 = arith.constant 0 : index
    %c0_3 = arith.constant 0 : index
    %10 = vector.load %arg2[%c0_2, %c0_3] : memref<8x32xbf16, #tpu.memory_space<vmem>>, vector<8x32xbf16>
    tpu.vector_store %arg2[%c0_2, %c0_3], %9 {strides = array<i32>} : memref<8x32xbf16, #tpu.memory_space<vmem>>, vector<8x32xbf16>,
    return
  }
  func.func @transform_0(%arg0: i32) -> (i32, i32) {
    %c0_i32 = arith.constant 0 : i32
    %c0_i32_0 = arith.constant 0 : i32
    return %arg0, %c0_i32 : i32, i32
  }
  func.func @transform_1(%arg0: i32) -> (i32, i32) {
    %c0_i32 = arith.constant 0 : i32
    %c0_i32_0 = arith.constant 0 : i32
    return %arg0, %c0_i32 : i32, i32
  }
}

module attributes {stable_mosaic.version = 11 : i64} {
  func.func @_gram_tile_kernel(%arg0: i32, %arg1: memref<1xi32, #tpu.memory_space<smem>>, %arg2: memref<1xi32, #tpu.memory_space<smem>>, %arg3: memref<8x32xbf16, #tpu.memory_space<vmem>>, %arg4: memref<8x32xbf16, #tpu.memory_space<vmem>>, %arg5: memref<8x1xi32, #tpu.memory_space<vmem>>, %arg6: memref<1x8xi32, #tpu.memory_space<vmem>>, %arg7: memref<8x128xf32, #tpu.memory_space<vmem>>) attributes {dimension_semantics = [#tpu.dimension_semantics<parallel>], iteration_bounds = array<i64: 1>, scalar_prefetch = 2 : i64, scratch_operands = 0 : i64, tpu.core_type = #tpu.core_type<tc>, window_params = [{transform_indices = @transform_0, window_bounds = array<i64: 8, 32>}, {transform_indices = @transform_1, window_bounds = array<i64: 8, 32>}, {transform_indices = @transform_2, window_bounds = array<i64: 8, 1>}, {transform_indices = @transform_3, window_bounds = array<i64: 1, 8>}, {transform_indices = @transform_4, window_bounds = array<i64: 8, 128>}]} {
    %0 = arith.index_cast %arg0 : i32 to index
    %1 = memref.load %arg1[%0] : memref<1xi32, #tpu.memory_space<smem>>
    %2 = arith.index_cast %arg0 : i32 to index
    %3 = memref.load %arg2[%2] : memref<1xi32, #tpu.memory_space<smem>>
    %4 = arith.cmpi eq, %1, %3 : i32
    %cst = arith.constant 1.000000e+00 : f32
    %cst_0 = arith.constant 2.000000e+00 : f32
    %5 = arith.select %4, %cst, %cst_0 : f32
    %c0 = arith.constant 0 : index
    %c0_1 = arith.constant 0 : index
    %6 = vector.load %arg3[%c0, %c0_1] : memref<8x32xbf16, #tpu.memory_space<vmem>>, vector<8x32xbf16>
    %c0_2 = arith.constant 0 : index
    %c0_3 = arith.constant 0 : index
    %7 = vector.load %arg4[%c0_2, %c0_3] : memref<8x32xbf16, #tpu.memory_space<vmem>>, vector<8x32xbf16>
    %cst_4 = arith.constant dense<0.000000e+00> : vector<8x8xf32>
    %8 = tpu.matmul %6, %7, %cst_4 {dimension_numbers = #tpu.dot_dimension_numbers<[1], [1], [0], [0], [0, 0, 1, 0], [], []>} : vector<8x32xbf16>, vector<8x32xbf16>, vector<8x8xf32> -> vector<8x8xf32>
    %c0_5 = arith.constant 0 : index
    %c0_6 = arith.constant 0 : index
    %9 = vector.load %arg5[%c0_5, %c0_6] : memref<8x1xi32, #tpu.memory_space<vmem>>, vector<8x1xi32>
    %c0_7 = arith.constant 0 : index
    %c0_8 = arith.constant 0 : index
    %10 = vector.load %arg6[%c0_7, %c0_8] : memref<1x8xi32, #tpu.memory_space<vmem>>, vector<1x8xi32>
    %11 = vector.broadcast %9 : vector<8x1xi32> to vector<8x8xi32>
    %12 = vector.broadcast %10 : vector<1x8xi32> to vector<8x8xi32>
    %13 = arith.cmpi eq, %11, %12 : vector<8x8xi32>
    %cst_9 = arith.constant 0.000000e+00 : f32
    %14 = vector.broadcast %cst_9 : f32 to vector<8x8xf32>
    %15 = arith.select %13, %8, %14 : vector<8x8xi1>, vector<8x8xf32>
    %16 = vector.shape_cast %15 : vector<8x8xf32> to vector<1x8x8xf32>
    %cst_10 = arith.constant dense<0.000000e+00> : vector<1xf32>
    %17 = vector.multi_reduction <add>, %16, %cst_10 [1, 2] : vector<1x8x8xf32> to vector<1xf32>
    %18 = vector.shape_cast %17 : vector<1xf32> to vector<1x1x1xf32>
    %19 = vector.extract %18[0, 0, 0] : f32 from vector<1x1x1xf32>
    %20 = vector.shape_cast %8 : vector<8x8xf32> to vector<1x8x8xf32>
    %cst_11 = arith.constant dense<0.000000e+00> : vector<1xf32>
    %21 = vector.multi_reduction <add>, %20, %cst_11 [1, 2] : vector<1x8x8xf32> to vector<1xf32>
    %22 = vector.shape_cast %21 : vector<1xf32> to vector<1x1x1xf32>
    %23 = vector.extract %22[0, 0, 0] : f32 from vector<1x1x1xf32>
    %24 = tpu.iota {dimensions = array<i32: 1>} : vector<8x128xi32>
    %c0_i32 = arith.constant 0 : i32
    %25 = vector.broadcast %c0_i32 : i32 to vector<8x128xi32>
    %26 = arith.cmpi eq, %24, %25 : vector<8x128xi32>
    %27 = arith.mulf %5, %19 : f32
    %c1_i32 = arith.constant 1 : i32
    %28 = vector.broadcast %c1_i32 : i32 to vector<8x128xi32>
    %29 = arith.cmpi eq, %24, %28 : vector<8x128xi32>
    %30 = arith.mulf %5, %23 : f32
    %cst_12 = arith.constant 0.000000e+00 : f32
    %31 = vector.broadcast %30 : f32 to vector<8x128xf32>
    %32 = vector.broadcast %cst_12 : f32 to vector<8x128xf32>
    %33 = arith.select %29, %31, %32 : vector<8x128xi1>, vector<8x128xf32>
    %34 = vector.broadcast %27 : f32 to vector<8x128xf32>
    %35 = arith.select %26, %34, %33 : vector<8x128xi1>, vector<8x128xf32>
    %c0_13 = arith.constant 0 : index
    %c0_14 = arith.constant 0 : index
    %36 = vector.load %arg7[%c0_13, %c0_14] : memref<8x128xf32, #tpu.memory_space<vmem>>, vector<8x128xf32>
    tpu.vector_store %arg7[%c0_13, %c0_14], %35 {strides = array<i32>} : memref<8x128xf32, #tpu.memory_space<vmem>>, vector<8x128xf32>,
    return
  }
  func.func @transform_0(%arg0: i32, %arg1: memref<1xi32, #tpu.memory_space<smem>>, %arg2: memref<1xi32, #tpu.memory_space<smem>>) -> (i32, i32) {
    %0 = arith.index_cast %arg0 : i32 to index
    %1 = memref.load %arg1[%0] : memref<1xi32, #tpu.memory_space<smem>>
    %c0_i32 = arith.constant 0 : i32
    %c0_i32_0 = arith.constant 0 : i32
    return %1, %c0_i32 : i32, i32
  }
  func.func @transform_1(%arg0: i32, %arg1: memref<1xi32, #tpu.memory_space<smem>>, %arg2: memref<1xi32, #tpu.memory_space<smem>>) -> (i32, i32) {
    %0 = arith.index_cast %arg0 : i32 to index
    %1 = memref.load %arg2[%0] : memref<1xi32, #tpu.memory_space<smem>>
    %c0_i32 = arith.constant 0 : i32
    %c0_i32_0 = arith.constant 0 : i32
    return %1, %c0_i32 : i32, i32
  }
  func.func @transform_2(%arg0: i32, %arg1: memref<1xi32, #tpu.memory_space<smem>>, %arg2: memref<1xi32, #tpu.memory_space<smem>>) -> (i32, i32) {
    %0 = arith.index_cast %arg0 : i32 to index
    %1 = memref.load %arg1[%0] : memref<1xi32, #tpu.memory_space<smem>>
    %c0_i32 = arith.constant 0 : i32
    %c0_i32_0 = arith.constant 0 : i32
    return %1, %c0_i32 : i32, i32
  }
  func.func @transform_3(%arg0: i32, %arg1: memref<1xi32, #tpu.memory_space<smem>>, %arg2: memref<1xi32, #tpu.memory_space<smem>>) -> (i32, i32) {
    %0 = arith.index_cast %arg0 : i32 to index
    %1 = memref.load %arg2[%0] : memref<1xi32, #tpu.memory_space<smem>>
    %c0_i32 = arith.constant 0 : i32
    %c0_i32_0 = arith.constant 0 : i32
    return %c0_i32, %1 : i32, i32
  }
  func.func @transform_4(%arg0: i32, %arg1: memref<1xi32, #tpu.memory_space<smem>>, %arg2: memref<1xi32, #tpu.memory_space<smem>>) -> (i32, i32) {
    %c0_i32 = arith.constant 0 : i32
    %c0_i32_0 = arith.constant 0 : i32
    return %arg0, %c0_i32 : i32, i32
  }
}

</mosaic_0001>

<bundles_post_ra>
// kernel: orthogonal_projection_loss.2
= control target key start
LH: loop header
LB: loop body
LE: loop exit
PB: predicated region body
PF: predicated region fallthrough
CT: control target
= control target key end

     0   :  { %6 = vsyncpa [#allocation3], 0  ;;  %s64_s6 = smov [#allocation2]   ;;  %s90_s0 = inlined_call_operand.hbm [shape: f32[8,32], index: 0, kind: input, shape index: {}]   ;;  %s91_s1 = inlined_call_operand.vmem [shape: bf16[8,32], index: 1, kind: output, shape index: {}]  }
   0x1   :  { %s13_s7 = sshll.u32 %s64_s6, 4  ;;  %s40_s10 = scalar_lea.hbm %s90_s0, 128  ;;  %s14_s7 = int_to_ptr.vmem [resolvable:$true] %s13_s7 }
   0x2   :  { %p41_p0 = scmp.ne.s32.totalorder %s90_s0, %s40_s10  ;;  %p44_p1 = scmp.lt.u32.totalorder %s40_s10, %s90_s0 }
   0x4   :  { %p46_p2 = pnand %p44_p1, %p41_p0 }
   0x6   :  { %49 = shalt.err (!%p46_p2)
}
   0x7   :  { %s50_s15 = scalar_lea.vmem %s14_s7, 128  ;;  %p55_p4 = scmp.lt.s32.totalorder %s14_s7, %s14_s7 }
   0x8   :  { %p51_p3 = scmp.ne.s32.totalorder %s14_s7, %s50_s15  ;;  %p56_p5 = scmp.lt.s32.totalorder %s50_s15, %s50_s15 }
   0xa   :  { %p57_p6 = por %p56_p5, %p55_p4 }
   0xc   :  { %p58_p7 = pnand %p57_p6, %p51_p3 }
   0xe   :  { %61 = shalt.err (!%p58_p7)
}
   0xf   :  { %16 = dma.hbm_to_vmem [thread:$0]  %s90_s0, 128, %s14_s7, [#allocation3]  }
  0x10   :  { %62 = dma.done.wait [#allocation3], 128  }
  0x11   :  { %63 = vsyncadd [#allocation3], 4294967168  ;;  %v20_v0 = vld [vmem:[#allocation2] sm:$0xff]  ;;  %vm22_vm0 = vcmask 261120   ;;  %vm30_vm1 = vcmask 257024  }
  0x12   :  { %v21_v1 = vmul.f32 %v20_v0, %v20_v0 }
  0x14   :  { %v23_v2 = vsel %vm22_vm0, %v21_v1, 0.0 }
  0x15   :  { %24 = vadd.xlane.f32.xlu0 %v23_v2 }
  0xa2   :  { %v25_v3 = vpop.xlane.xlu0 %24 }
  0xa3   :  { %v26_v4 = vmax.f32 %v25_v3, 1e-24 }
  0xa5   :  { %38 = vrsqrt.f32 %v26_v4 }
  0xaf   :  { %v39_v5 = vpop.eup %38 }
  0xb0   :  { %v28_v6 = vmul.f32 %v39_v5, %v20_v0 }
  0xb2   :  { %v29_v7 = vpack.c.bf16 %v28_v6, %v28_v6 }
  0xb4   :  { %31 = vst.msk [vmem:[%s91_s1] sm:$0xf] %vm30_vm1, %v29_v7 }
  0xb5   :  { %36 = vsyncpa [#allocation3], 1 }

// kernel: orthogonal_projection_loss.3
= control target key start
LH: loop header
LB: loop body
LE: loop exit
PB: predicated region body
PF: predicated region fallthrough
CT: control target
= control target key end

     0   :  { %v229_v0 = vmov 0.0   ;;  %vm230_vm0 = vmmov 0   ;;  %v231_v1 = vmov 0   ;;  %vm93_vm1 = vcmask 261120   ;;  %s300_s1 = inlined_call_operand.<no memory space> [shape: s32[1], index: 1, kind: input, shape index: {}, may-alias: {0,1}]   ;;  %s301_s0 = inlined_call_operand.<no memory space> [shape: s32[1], index: 0, kind: input, shape index: {}, may-alias: {0,1}]   ;;  %s302_s3 = inlined_call_operand.vmem [shape: bf16[8,32], index: 3, kind: input, shape index: {}, may-alias: {2,3}]   ;;  %s303_s4 = inlined_call_operand.vmem [shape: s32[8,1], index: 4, kind: input, shape index: {}]   ;;  %s304_s2 = inlined_call_operand.vmem [shape: bf16[8,32], index: 2, kind: input, shape index: {}, may-alias: {2,3}]   ;;  %s305_s5 = inlined_call_operand.vmem [shape: s32[1,8], index: 5, kind: input, shape index: {}]   ;;  %s306_s6 = inlined_call_operand.vmem [shape: f32[8,128], index: 6, kind: output, shape index: {}]  }
   0x1   :  { %215 = vmatprep.subr.bf16.mxu0 %v229_v0  ;;  %p70_p0 = scmp.lt.s32.totalorder %s300_s1, 0  ;;  %217 = vmatprep.mubr.msk.bf16.mxu0 %vm230_vm0, %v229_v0  ;;  %p64_p1 = scmp.lt.s32.totalorder %s301_s0, 0  ;;  %vm151_vm3 = vcmask 64512   ;;  %v172_v29 = vlaneseq }
   0x2   :  { %228 = vset.pattern.permute.xlu0 %v231_v1  ;;  %p89_p2 = scmp.eq.s32.totalorder %s301_s0, %s300_s1 }
   0x3   :  { %s71_s27 = scalar_select %p70_p0, %s300_s1, 0  ;;  %v173_v30 = vand.u32 127, %v172_v29 }
   0x4   :  { %s65_s30 = scalar_select %p64_p1, %s301_s0, 0 }
   0x5   :  { %s209_s7 = sshll.u32 %s71_s27, 2  ;;  %vm176_vm4 = vcmp.eq.s32.totalorder %v173_v30, 1  ;;  %vm174_vm5 = vcmp.eq.s32.totalorder %v173_v30, 0 }
   0x6   :  { %s73_s10 = scalar_lea.vmem %s302_s3, %s209_s7  ;;  %s208_s11 = sshll.u32 %s65_s30, 2 }
   0x7   :  { %v92_v2 = vld [vmem:[%s73_s10] sm:$0xf]  ;;  %s210_s12 = sshll.u32 %s65_s30, 3  ;;  %s67_s18 = scalar_lea.vmem %s304_s2, %s208_s11 }
   0x8   :  { %v98_v3 = vsel %vm93_vm1, %v92_v2, 0  ;;  %s79_s15 = scalar_lea.vmem %s303_s4, %s210_s12  ;;  %v91_v5 = vld [vmem:[%s67_s18] sm:$0xf]  ;;  %s84_s3 = scalar_lea.vmem %s305_s5, %s71_s27 }
   0x9   :  { %216 = vmatpush3.bf16.xpose.msra.mxu0 %v98_v3  ;;  %v140_v4 = vld [vmem:[%s79_s15] sm:$0xff]  ;;  %s90_s22 = scalar_select %p89_p2, 1.0, 2.0 }
   0xa   :  { %143 = vperm.xlu0 %228, %v140_v4   ;;  %v212_v6 = vld [vmem:[%s84_s3] ss:$0 sm:$0xff] }
  0x10   :  { %218 = vmatmul.mubr.msk.bf16.vlgmr.msra.gmra.mrb[0].mxu0 %vm93_vm1, %v91_v5 }
  0x89   :  { %v144_v7 = vpop.permute.xlu0 %143 }
  0x8a   :  { %vm149_vm2 = vcmp.eq.s32.totalorder %v144_v7, %v212_v6 }
  0xe3   :  { %v134_v8 = vpop.f32.mrb[0].mxu0 }
  0xe4   :  { %v219_v9 = vpop.f32.mrb[1].mxu0  ;;  %v162_v10 = vsel %vm151_vm3, %v134_v8, 0.0  ;;  %v150_v11 = vsel %vm149_vm2, %v134_v8, 0.0 }
  0xe5   :  { %163 = vadd.xlane.f32.xlu1 %v162_v10  ;;  %v137_v12 = vpop.f32.mrb[2].mxu0  ;;  %v152_v13 = vsel %vm151_vm3, %v150_v11, 0.0 }
  0xe6   :  { %153 = vadd.xlane.f32.xlu0 %v152_v13  ;;  %v220_v14 = vpop.f32.mrb[3].mxu0 }
 0x172   :  { %v164_v15 = vpop.xlane.xlu1 %163 }
 0x173   :  { %v165_v16 = vrot.slane %v164_v15, 4  ;;  %v154_v17 = vpop.xlane.xlu0 %153 }
 0x174   :  { %v155_v18 = vrot.slane %v154_v17, 4 }
 0x175   :  { %v166_v19 = vadd.f32 %v165_v16, %v164_v15 }
 0x176   :  { %v156_v20 = vadd.f32 %v155_v18, %v154_v17 }
 0x177   :  { %v167_v21 = vrot.slane %v166_v19, 2 }
 0x178   :  { %v157_v22 = vrot.slane %v156_v20, 2 }
 0x179   :  { %v168_v23 = vadd.f32 %v167_v21, %v166_v19 }
 0x17a   :  { %v158_v24 = vadd.f32 %v157_v22, %v156_v20 }
 0x17b   :  { %v169_v25 = vrot.slane %v168_v23, 1 }
 0x17c   :  { %v159_v26 = vrot.slane %v158_v24, 1 }
 0x17d   :  { %v170_v27 = vadd.f32 %v169_v25, %v168_v23 }
 0x17e   :  { %v160_v28 = vadd.f32 %v159_v26, %v158_v24 }
 0x180   :  { %221 = vpush %v160_v28 }
 0x181   :  { %223 = vpush %v170_v27 }
 0x1b1   :  { %s222_s23 = spop %221 }
 0x1b2   :  { %s175_s24 = smul.f32 %s222_s23, %s90_s22  ;;  %s224_s25 = spop %223 }
 0x1b3   :  { %s177_s26 = smul.f32 %s224_s25, %s90_s22 }
 0x1b4   :  { %v180_v31 = vstv %s175_s24 }
 0x1b5   :  { %v178_v32 = vstv %s177_s26 }
 0x1b6   :  { %v179_v33 = vsel %vm176_vm4, %v178_v32, 0.0 }
 0x1b7   :  { %v181_v34 = vsel %vm174_vm5, %v180_v31, %v179_v33 }
 0x1b8   :  { %182 = vst [vmem:[%s306_s6] sm:$0xff] %v181_v34 }

</bundles_post_ra>
